<compile_context>
chip_gen: v6e
topology: v6e:2x2x1
jax: 0.10.0
libtpu: 0.0.40
codegen_flags: <defaults>
</compile_context>

<pallas_src>
import functools

import jax
import jax.numpy as jnp
from jax import lax
from jax.experimental import pallas as pl
from jax.experimental.pallas import tpu as pltpu


def _linear_kernel_f32_out(x_ref, w_ref, b_ref, o_ref):
    """y = x @ w.T + b, accumulated directly into the resident f32 output tile."""
    k = pl.program_id(2)

    @pl.when(k == 0)
    def _():
        # Initialize with the bias -> no separate finalize pass needed.
        o_ref[...] = jnp.broadcast_to(b_ref[...], o_ref.shape)

    # Contract x's K (axis 1) against w's K (axis 1) -> (tm, tn) == x @ w.T.
    # Last-dim/last-dim contraction lowers natively to the MXU.
    o_ref[...] += lax.dot_general(
        x_ref[...],
        w_ref[...],
        dimension_numbers=(((1,), (1,)), ((), ())),
        preferred_element_type=jnp.float32,
    )


def _linear_kernel_accum(x_ref, w_ref, b_ref, o_ref, acc_ref):
    """Same, but with an f32 VMEM accumulator for low-precision output dtypes."""
    k = pl.program_id(2)

    @pl.when(k == 0)
    def _():
        acc_ref[...] = jnp.broadcast_to(b_ref[...].astype(jnp.float32), acc_ref.shape)

    acc_ref[...] += lax.dot_general(
        x_ref[...],
        w_ref[...],
        dimension_numbers=(((1,), (1,)), ((), ())),
        preferred_element_type=jnp.float32,
    )

    @pl.when(k == pl.num_programs(2) - 1)
    def _():
        o_ref[...] = acc_ref[...].astype(o_ref.dtype)


def _cdiv(a, b):
    return -(-a // b)


def _round_up(v, m):
    return ((v + m - 1) // m) * m


def _balanced_tile(dim, tile_max, align):
    """Aligned tile size that evens out the last (ragged) tile instead of
    leaving one mostly-padded tile (e.g. M=600, tmax=512 -> 304, not 512)."""
    dim_aligned = _round_up(max(dim, 1), align)
    if dim_aligned <= tile_max:
        return dim_aligned
    n_tiles = _cdiv(dim, tile_max)
    return _round_up(_cdiv(dim, n_tiles), align)


@functools.partial(jax.jit, static_argnames=("tm", "tn", "tk", "compute_dtype"))
def my_linear(x, w, b, *, tm=512, tn=512, tk=1024, compute_dtype=jnp.bfloat16):
    """x: (M, K); w: (N, K) PyTorch (output, input) layout; b: (N,)."""
    M, K = x.shape
    N, Kw = w.shape
    assert K == Kw, "weight inner dim must match x inner dim"

    out_dtype = x.dtype

    # bf16 operands feed the MXU at its peak rate and halve HBM traffic /
    # per-tile VMEM; accumulation stays in f32.  Bias stays f32.
    xc = x if compute_dtype is None else x.astype(compute_dtype)
    wc = w if compute_dtype is None else w.astype(compute_dtype)
    bf = b.astype(jnp.float32)

    # Balanced, (8,128)-aligned tiles.
    tm = _balanced_tile(M, tm, 8)
    tn = _balanced_tile(N, tn, 128)
    tk = _balanced_tile(K, tk, 128)

    # v7x has 2 TensorCores: if M fits in a single tile, make sure the
    # parallel N axis still has >= 2 tiles (when N is large enough) so both
    # cores get work.
    if (_cdiv(_round_up(M, 8), tm) == 1 and N > 128
            and _cdiv(_round_up(N, 128), tn) == 1):
        tn = _round_up(_cdiv(N, 2), 128)

    Mp = _round_up(M, tm)
    Np = _round_up(N, tn)
    Kp = _round_up(K, tk)

    # Zero-pad ragged edges (zeros in K contribute nothing to the contraction;
    # padded M rows / N cols are sliced off below).
    xp = xc if (Mp == M and Kp == K) else jnp.pad(xc, ((0, Mp - M), (0, Kp - K)))
    wp = wc if (Np == N and Kp == K) else jnp.pad(wc, ((0, Np - N), (0, Kp - K)))
    bp = bf if Np == N else jnp.pad(bf, (0, Np - N))
    b2d = bp.reshape(1, Np)

    grid = (Mp // tm, Np // tn, Kp // tk)

    out_is_f32 = jnp.dtype(out_dtype) == jnp.dtype(jnp.float32)
    kernel = _linear_kernel_f32_out if out_is_f32 else _linear_kernel_accum
    scratch_shapes = [] if out_is_f32 else [pltpu.VMEM((tm, tn), jnp.float32)]

    # Explicit VMEM budget: double-buffered x/w/out tiles + bias + scratch,
    # with headroom, capped at the v7x-safe ceiling (64 MiB per TensorCore).
    x_bytes = jnp.dtype(xp.dtype).itemsize
    w_bytes = jnp.dtype(wp.dtype).itemsize
    o_bytes = jnp.dtype(out_dtype).itemsize
    vmem_need = (2 * tm * tk * x_bytes + 2 * tk * tn * w_bytes
                 + 2 * tm * tn * o_bytes + 2 * tn * 4
                 + (0 if out_is_f32 else tm * tn * 4))
    vmem_limit = int(min(max(vmem_need * 3 // 2 + (8 << 20), 32 << 20), 64 << 20))

    cost = pl.CostEstimate(
        flops=2 * M * N * K,
        transcendentals=0,
        bytes_accessed=M * K * x_bytes + N * K * w_bytes + M * N * o_bytes + N * 4,
    )

    out = pl.pallas_call(
        kernel,
        out_shape=jax.ShapeDtypeStruct((Mp, Np), out_dtype),
        grid_spec=pltpu.PrefetchScalarGridSpec(
            num_scalar_prefetch=0,
            grid=grid,
            in_specs=[
                pl.BlockSpec((tm, tk), lambda i, j, k: (i, k)),   # x tile
                pl.BlockSpec((tn, tk), lambda i, j, k: (j, k)),   # w tile (N, K) native layout
                pl.BlockSpec((1, tn), lambda i, j, k: (0, j)),    # bias tile
            ],
            out_specs=pl.BlockSpec((tm, tn), lambda i, j, k: (i, j)),
            scratch_shapes=scratch_shapes,
        ),
        compiler_params=pltpu.CompilerParams(
            dimension_semantics=("parallel", "parallel", "arbitrary"),
            vmem_limit_bytes=vmem_limit,
        ),
        cost_estimate=cost,
    )(xp, wp, b2d)

    if (Mp, Np) != (M, N):
        out = out[:M, :N]
    return out


if __name__ == "__main__":
    key = jax.random.PRNGKey(0)
    k_x, k_w, k_b = jax.random.split(key, 3)

    # Small shapes consistent with MyLinear(input=32, output=16), batch=8.
    M, K, N = 8, 32, 16

    x = jax.random.normal(k_x, (M, K), dtype=jnp.float32)
    w = jax.random.normal(k_w, (N, K), dtype=jnp.float32)  # (output, input)
    b = jax.random.normal(k_b, (N,), dtype=jnp.float32)

    # Exact f32 path (matches the PyTorch forward bit-for-bit semantics).
    out_f32 = my_linear(x, w, b, compute_dtype=None)
    jax.block_until_ready(out_f32)
    ref = x @ w.T + b
    assert out_f32.shape == (M, N)
    assert out_f32.dtype == jnp.float32
    assert jnp.allclose(out_f32, ref, atol=1e-5, rtol=1e-5)

    # Default bf16-MXU path (f32 accumulation, f32 output).
    out_bf = my_linear(x, w, b)
    jax.block_until_ready(out_bf)
    ref_bf = (x.astype(jnp.bfloat16).astype(jnp.float32)
              @ w.astype(jnp.bfloat16).astype(jnp.float32).T) + b
    assert out_bf.shape == (M, N)
    assert out_bf.dtype == jnp.float32
    assert jnp.allclose(out_bf, ref_bf, atol=1e-2, rtol=1e-2)

    print("KERNEL_OK")
</pallas_src>

<mosaic_0001>
module attributes {stable_mosaic.version = 11 : i64} {
  func.func @_linear_kernel_f32_out(%arg0: i32, %arg1: i32, %arg2: i32, %arg3: memref<8x128xf32, #tpu.memory_space<vmem>>, %arg4: memref<128x128xf32, #tpu.memory_space<vmem>>, %arg5: memref<1x128xf32, #tpu.memory_space<vmem>>, %arg6: memref<8x128xf32, #tpu.memory_space<vmem>>) attributes {dimension_semantics = [#tpu.dimension_semantics<parallel>, #tpu.dimension_semantics<parallel>, #tpu.dimension_semantics<arbitrary>], iteration_bounds = array<i64: 1, 1, 1>, scalar_prefetch = 0 : i64, scratch_operands = 0 : i64, tpu.core_type = #tpu.core_type<tc>, window_params = [{transform_indices = @transform_0, window_bounds = array<i64: 8, 128>}, {transform_indices = @transform_1, window_bounds = array<i64: 128, 128>}, {transform_indices = @transform_2, window_bounds = array<i64: 1, 128>}, {transform_indices = @transform_3, window_bounds = array<i64: 8, 128>}]} {
    %c0_i32 = arith.constant 0 : i32
    %0 = arith.cmpi eq, %arg2, %c0_i32 : i32
    %1 = arith.extui %0 : i1 to i32
    %c0_i32_0 = arith.constant 0 : i32
    %2 = arith.cmpi ne, %1, %c0_i32_0 : i32
    scf.if %2 {
      %c0_8 = arith.constant 0 : index
      %c0_9 = arith.constant 0 : index
      %9 = vector.load %arg5[%c0_8, %c0_9] : memref<1x128xf32, #tpu.memory_space<vmem>>, vector<1x128xf32>
      %10 = vector.shape_cast %9 : vector<1x128xf32> to vector<1x128xf32>
      %11 = vector.broadcast %10 : vector<1x128xf32> to vector<8x128xf32>
      %c0_10 = arith.constant 0 : index
      %c0_11 = arith.constant 0 : index
      %12 = vector.load %arg6[%c0_10, %c0_11] : memref<8x128xf32, #tpu.memory_space<vmem>>, vector<8x128xf32>
      tpu.vector_store %arg6[%c0_10, %c0_11], %11 {strides = array<i32>} : memref<8x128xf32, #tpu.memory_space<vmem>>, vector<8x128xf32>,
    } else {
    }
    %c0 = arith.constant 0 : index
    %c0_1 = arith.constant 0 : index
    %3 = vector.load %arg6[%c0, %c0_1] : memref<8x128xf32, #tpu.memory_space<vmem>>, vector<8x128xf32>
    %c0_2 = arith.constant 0 : index
    %c0_3 = arith.constant 0 : index
    %4 = vector.load %arg3[%c0_2, %c0_3] : memref<8x128xf32, #tpu.memory_space<vmem>>, vector<8x128xf32>
    %c0_4 = arith.constant 0 : index
    %c0_5 = arith.constant 0 : index
    %5 = vector.load %arg4[%c0_4, %c0_5] : memref<128x128xf32, #tpu.memory_space<vmem>>, vector<128x128xf32>
    %cst = arith.constant dense<0.000000e+00> : vector<8x128xf32>
    %6 = tpu.matmul %4, %5, %cst {dimension_numbers = #tpu.dot_dimension_numbers<[1], [1], [0], [0], [0, 0, 1, 0], [], []>} : vector<8x128xf32>, vector<128x128xf32>, vector<8x128xf32> -> vector<8x128xf32>
    %7 = arith.addf %3, %6 : vector<8x128xf32>
    %c0_6 = arith.constant 0 : index
    %c0_7 = arith.constant 0 : index
    %8 = vector.load %arg6[%c0_6, %c0_7] : memref<8x128xf32, #tpu.memory_space<vmem>>, vector<8x128xf32>
    tpu.vector_store %arg6[%c0_6, %c0_7], %7 {strides = array<i32>} : memref<8x128xf32, #tpu.memory_space<vmem>>, vector<8x128xf32>,
    return
  }
  func.func @transform_0(%arg0: i32, %arg1: i32, %arg2: i32) -> (i32, i32) {
    %c0_i32 = arith.constant 0 : i32
    return %arg0, %arg2 : i32, i32
  }
  func.func @transform_1(%arg0: i32, %arg1: i32, %arg2: i32) -> (i32, i32) {
    %c0_i32 = arith.constant 0 : i32
    return %arg1, %arg2 : i32, i32
  }
  func.func @transform_2(%arg0: i32, %arg1: i32, %arg2: i32) -> (i32, i32) {
    %c0_i32 = arith.constant 0 : i32
    %c0_i32_0 = arith.constant 0 : i32
    return %c0_i32, %arg1 : i32, i32
  }
  func.func @transform_3(%arg0: i32, %arg1: i32, %arg2: i32) -> (i32, i32) {
    %c0_i32 = arith.constant 0 : i32
    return %arg0, %arg1 : i32, i32
  }
}

</mosaic_0001>

<bundles_post_ra>
// kernel: my_linear.1
= control target key start
LH: loop header
LB: loop body
LE: loop exit
PB: predicated region body
PF: predicated region fallthrough
CT: control target
= control target key end

     0   :  { %v209_v1 = vmov 0.0   ;;  %vm210_vm0 = vmmov 0   ;;  %s289_s0 = inlined_call_operand.vmem [shape: f32[8,128], index: 0, kind: input, shape index: {}]   ;;  %s290_s1 = inlined_call_operand.vmem [shape: f32[128,128], index: 1, kind: input, shape index: {}]   ;;  %s291_s2 = inlined_call_operand.vmem [shape: f32[1,128], index: 2, kind: input, shape index: {}]   ;;  %s292_s3 = inlined_call_operand.hbm [shape: f32[8,128], index: 3, kind: output, shape index: {}]  }
   0x1   :  { %v44_v0 = vld [vmem:[%s290_s1 + $0x78] sm:$0xff]  ;;  %149 = vmatprep.subr.mxu0 %v209_v1  ;;  %181 = vmatprep.mubr.msk.f32.mxu0 %vm210_vm0, %v209_v1  ;;  %v43_v2 = vld [vmem:[%s290_s1 + $0x70] sm:$0xff] }
   0x2   :  { %150 = vmatpush3.xpose.msra.mxu0 %v44_v0 }
   0x3   :  { %151 = vmatprep.subr.mxu0 %v209_v1 }
   0x6   :  { %152 = vmatpush3.xpose.msra.mxu0 %v43_v2 }
   0x7   :  { %8 = vsyncpa [#allocation3], 0  ;;  %153 = vmatprep.subr.mxu0 %v209_v1  ;;  %v42_v3 = vld [vmem:[%s290_s1 + $0x68] sm:$0xff]  ;;  %v41_v4 = vld [vmem:[%s290_s1 + $0x60] sm:$0xff]  ;;  %s211_s21 = smov [#allocation2]  }
   0x8   :  { %v40_v5 = vld [vmem:[%s290_s1 + $0x58] sm:$0xff]  ;;  %v39_v6 = vld [vmem:[%s290_s1 + $0x50] sm:$0xff]  ;;  %v38_v7 = vld [vmem:[%s290_s1 + $0x48] sm:$0xff]  ;;  %s123_s22 = sshll.u32 %s211_s21, 4  ;;  %s124_s22 = int_to_ptr.vmem [resolvable:$true] %s123_s22 }
   0x9   :  { %v37_v8 = vld [vmem:[%s290_s1 + $0x40] sm:$0xff]  ;;  %v36_v9 = vld [vmem:[%s290_s1 + $0x38] sm:$0xff]  ;;  %v35_v10 = vld [vmem:[%s290_s1 + $0x30] sm:$0xff]  ;;  %s187_s23 = scalar_lea.vmem %s124_s22, 128  ;;  %p192_p1 = scmp.lt.s32.totalorder %s124_s22, %s124_s22 }
   0xa   :  { %154 = vmatpush3.xpose.msra.mxu0 %v42_v3  ;;  %v34_v11 = vld [vmem:[%s290_s1 + $0x28] sm:$0xff]  ;;  %v33_v12 = vld [vmem:[%s290_s1 + $0x20] sm:$0xff]  ;;  %v32_v13 = vld [vmem:[%s290_s1 + $0x18] sm:$0xff]  ;;  %p188_p0 = scmp.ne.s32.totalorder %s124_s22, %s187_s23  ;;  %p193_p2 = scmp.lt.s32.totalorder %s187_s23, %s187_s23 }
   0xb   :  { %155 = vmatprep.subr.mxu0 %v209_v1  ;;  %v31_v14 = vld [vmem:[%s290_s1 + $0x10] sm:$0xff]  ;;  %v30_v15 = vld [vmem:[%s290_s1 + $0x8] sm:$0xff]  ;;  %v29_v16 = vld [vmem:[%s290_s1] sm:$0xff] }
   0xc   :  { %v28_v17 = vld [vmem:[%s289_s0] sm:$0xff]  ;;  %p194_p3 = por %p193_p2, %p192_p1 }
   0xd   :  { %v131_v18 = vld [vmem:[%s291_s2] ss:$0 sm:$0xff] }
   0xe   :  { %156 = vmatpush3.xpose.msra.mxu0 %v41_v4  ;;  %p195_p4 = pnand %p194_p3, %p188_p0 }
   0xf   :  { %157 = vmatprep.subr.mxu0 %v209_v1 }
  0x12   :  { %158 = vmatpush3.xpose.msra.mxu0 %v40_v5 }
  0x13   :  { %159 = vmatprep.subr.mxu0 %v209_v1 }
  0x16   :  { %160 = vmatpush3.xpose.msra.mxu0 %v39_v6 }
  0x17   :  { %161 = vmatprep.subr.mxu0 %v209_v1 }
  0x1a   :  { %162 = vmatpush3.xpose.msra.mxu0 %v38_v7 }
  0x1b   :  { %163 = vmatprep.subr.mxu0 %v209_v1 }
  0x1e   :  { %164 = vmatpush3.xpose.msra.mxu0 %v37_v8 }
  0x1f   :  { %165 = vmatprep.subr.mxu0 %v209_v1 }
  0x22   :  { %166 = vmatpush3.xpose.msra.mxu0 %v36_v9 }
  0x23   :  { %167 = vmatprep.subr.mxu0 %v209_v1 }
  0x26   :  { %168 = vmatpush3.xpose.msra.mxu0 %v35_v10 }
  0x27   :  { %169 = vmatprep.subr.mxu0 %v209_v1 }
  0x2a   :  { %170 = vmatpush3.xpose.msra.mxu0 %v34_v11 }
  0x2b   :  { %171 = vmatprep.subr.mxu0 %v209_v1 }
  0x2e   :  { %172 = vmatpush3.xpose.msra.mxu0 %v33_v12 }
  0x2f   :  { %173 = vmatprep.subr.mxu0 %v209_v1 }
  0x32   :  { %174 = vmatpush3.xpose.msra.mxu0 %v32_v13 }
  0x33   :  { %175 = vmatprep.subr.mxu0 %v209_v1 }
  0x36   :  { %176 = vmatpush3.xpose.msra.mxu0 %v31_v14 }
  0x37   :  { %177 = vmatprep.subr.mxu0 %v209_v1 }
  0x3a   :  { %178 = vmatpush3.xpose.msra.mxu0 %v30_v15 }
  0x3b   :  { %179 = vmatprep.subr.mxu0 %v209_v1 }
  0x3e   :  { %180 = vmatpush3.xpose.msra.mxu0 %v29_v16 }
  0x41   :  { %182 = vmatmul.mubr.f32.vlgmr.msra.gmra.mxu0 %v28_v17 }
 0x101   :  { %v111_v19 = vpop.f32.mrf.mxu0 }
 0x102   :  { %v115_v20 = vadd.f32 %v131_v18, %v111_v19 }
 0x103   :  { %v183_v21 = vpop.f32.mrf.mxu0 }
 0x104   :  { %116 = vst [vmem:[#allocation2] sm:$0xff] %v115_v20 }
 0x105   :  { %198 = shalt.err (!%p195_p4)
}
 0x106   :  { %126 = dma.vmem_to_hbm [thread:$0]  %s124_s22, 128, %s292_s3, [#allocation3]  }
 0x107   :  { %207 = dma.done.wait [#allocation3], 128  }
 0x108   :  { %208 = vsyncadd [#allocation3], 4294967168 }
 0x109   :  { %130 = vsyncpa [#allocation3], 1 }

</bundles_post_ra>
